<compile_context>
chip_gen: v5e
topology: v5e:2x2
jax: 0.10.0
libtpu: 0.0.40
codegen_flags: <defaults>
</compile_context>

<pallas_src>
import math
import numpy as np
import jax
import jax.numpy as jnp
from jax.experimental import pallas as pl
from jax.experimental.pallas import tpu as pltpu


# ------------------------------ global knobs -------------------------------

VMEM_LIMIT = 32 * 1024 * 1024      # explicit scoped-VMEM cap (safe on v5e/v6e/v7x)
ROW_TILE = 256                     # row tile for M-parallel kernels (multiple of 8)
LANE = 128                         # TPU lane width; attention head dim padded to this
# Matmul input precision.  Keep f32 for parity with the fp32 PyTorch forward;
# set to jnp.bfloat16 on v6e/v7x for the fast MXU path (accumulation stays f32).
MATMUL_DTYPE = jnp.float32


def _mm(a, b):
    return jnp.dot(a.astype(MATMUL_DTYPE), b.astype(MATMUL_DTYPE),
                   preferred_element_type=jnp.float32)


def _params(grid_len=1):
    return pltpu.CompilerParams(dimension_semantics=("parallel",) * grid_len,
                                vmem_limit_bytes=VMEM_LIMIT)


def _ln(y, g, b, eps=1e-5):
    mu = jnp.mean(y, axis=-1, keepdims=True)
    var = jnp.mean((y - mu) ** 2, axis=-1, keepdims=True)
    return (y - mu) * jax.lax.rsqrt(var + eps) * g + b


def _row_grid(M):
    if M <= ROW_TILE:
        return M, 1
    return ROW_TILE, pl.cdiv(M, ROW_TILE)


# ----------------------------- Pallas kernels ------------------------------

def _linear_kernel(act):
    def kernel(x_ref, w_ref, b_ref, o_ref):
        y = _mm(x_ref[...], w_ref[...]) + b_ref[...]
        if act == "relu":
            y = jnp.maximum(y, 0.0)
        elif act == "tanh":
            y = jnp.tanh(y)
        o_ref[...] = y
    return kernel


def linear(x, w, b=None, act="none"):
    """y = act(x @ w + b), rows tiled across a 'parallel' grid axis."""
    K = x.shape[-1]
    N = w.shape[1]
    lead = x.shape[:-1]
    M = int(np.prod(lead)) if lead else 1
    x2 = x.reshape(M, K).astype(jnp.float32)
    if b is None:
        b = jnp.zeros((N,), jnp.float32)
    b2 = b.reshape(1, N).astype(jnp.float32)
    tm, steps = _row_grid(M)
    out = pl.pallas_call(
        _linear_kernel(act),
        grid=(steps,),
        in_specs=[pl.BlockSpec((tm, K), lambda i: (i, 0)),
                  pl.BlockSpec((K, N), lambda i: (0, 0)),
                  pl.BlockSpec((1, N), lambda i: (0, 0))],
        out_specs=pl.BlockSpec((tm, N), lambda i: (i, 0)),
        out_shape=jax.ShapeDtypeStruct((M, N), jnp.float32),
        compiler_params=_params(1),
    )(x2, w.astype(jnp.float32), b2)
    return out.reshape(lead + (N,))


def _linear_res_ln_kernel(eps):
    def kernel(x_ref, w_ref, b_ref, r_ref, g_ref, bt_ref, o_ref):
        y = r_ref[...] + _mm(x_ref[...], w_ref[...]) + b_ref[...]
        o_ref[...] = _ln(y, g_ref[...], bt_ref[...], eps)
    return kernel


def linear_residual_ln(x, w, b, res, gamma, beta, eps=1e-5):
    """LayerNorm(res + x @ w + b) -- matmul with fused residual+LN epilogue."""
    K = x.shape[-1]
    E = w.shape[1]
    lead = x.shape[:-1]
    M = int(np.prod(lead))
    tm, steps = _row_grid(M)
    out = pl.pallas_call(
        _linear_res_ln_kernel(eps),
        grid=(steps,),
        in_specs=[pl.BlockSpec((tm, K), lambda i: (i, 0)),
                  pl.BlockSpec((K, E), lambda i: (0, 0)),
                  pl.BlockSpec((1, E), lambda i: (0, 0)),
                  pl.BlockSpec((tm, E), lambda i: (i, 0)),
                  pl.BlockSpec((1, E), lambda i: (0, 0)),
                  pl.BlockSpec((1, E), lambda i: (0, 0))],
        out_specs=pl.BlockSpec((tm, E), lambda i: (i, 0)),
        out_shape=jax.ShapeDtypeStruct((M, E), jnp.float32),
        compiler_params=_params(1),
    )(x.reshape(M, K).astype(jnp.float32), w.astype(jnp.float32),
      b.reshape(1, E).astype(jnp.float32), res.reshape(M, E).astype(jnp.float32),
      gamma.reshape(1, E), beta.reshape(1, E))
    return out.reshape(lead + (E,))


def _ffn_res_ln_kernel(eps):
    def kernel(x_ref, w1_ref, b1_ref, w2_ref, b2_ref, g_ref, bt_ref, o_ref):
        x = x_ref[...]
        h = jnp.maximum(_mm(x, w1_ref[...]) + b1_ref[...], 0.0)
        y = x + _mm(h, w2_ref[...]) + b2_ref[...]
        o_ref[...] = _ln(y, g_ref[...], bt_ref[...], eps)
    return kernel


def ffn_residual_ln(x, w1, b1, w2, b2, gamma, beta, eps=1e-5):
    """LayerNorm(x + relu(x@w1+b1)@w2 + b2) -- whole ReLU FFN in one kernel."""
    E = x.shape[-1]
    F = w1.shape[1]
    lead = x.shape[:-1]
    M = int(np.prod(lead))
    tm, steps = _row_grid(M)
    out = pl.pallas_call(
        _ffn_res_ln_kernel(eps),
        grid=(steps,),
        in_specs=[pl.BlockSpec((tm, E), lambda i: (i, 0)),
                  pl.BlockSpec((E, F), lambda i: (0, 0)),
                  pl.BlockSpec((1, F), lambda i: (0, 0)),
                  pl.BlockSpec((F, E), lambda i: (0, 0)),
                  pl.BlockSpec((1, E), lambda i: (0, 0)),
                  pl.BlockSpec((1, E), lambda i: (0, 0)),
                  pl.BlockSpec((1, E), lambda i: (0, 0))],
        out_specs=pl.BlockSpec((tm, E), lambda i: (i, 0)),
        out_shape=jax.ShapeDtypeStruct((M, E), jnp.float32),
        compiler_params=_params(1),
    )(x.reshape(M, E).astype(jnp.float32), w1, b1.reshape(1, F), w2,
      b2.reshape(1, E), gamma.reshape(1, E), beta.reshape(1, E))
    return out.reshape(lead + (E,))


def _attn_kernel(scale, causal):
    def kernel(q_ref, k_ref, v_ref, o_ref):
        q = q_ref[...]
        k = k_ref[...]
        v = v_ref[...]
        # scores on the MXU: batched q @ k^T  (batch dim = batch*heads)
        s = jax.lax.dot_general(q.astype(MATMUL_DTYPE), k.astype(MATMUL_DTYPE),
                                (((2,), (2,)), ((0,), (0,))),
                                preferred_element_type=jnp.float32) * scale
        if causal:
            Sq, Sk = s.shape[1], s.shape[2]
            ii = jax.lax.broadcasted_iota(jnp.int32, (Sq, Sk), 0)
            jj = jax.lax.broadcasted_iota(jnp.int32, (Sq, Sk), 1)
            s = s + jnp.where(jj <= ii, 0.0, -1e30)[None, :, :]
        s = s - jnp.max(s, axis=-1, keepdims=True)
        p = jnp.exp(s)
        p = p * pl.reciprocal(jnp.sum(p, axis=-1, keepdims=True), approx=True)
        o_ref[...] = jax.lax.dot_general(p.astype(MATMUL_DTYPE), v.astype(MATMUL_DTYPE),
                                         (((2,), (1,)), ((0,), (0,))),
                                         preferred_element_type=jnp.float32)
    return kernel


def scaled_attention(q, k, v, scale, causal):
    """q: (BH, Sq, Dp), k/v: (BH, Sk, Dp), Dp multiple of 128 (zero-padded head dim)."""
    BH, Sq, Dp = q.shape
    Sk = k.shape[1]
    tb = BH if BH <= 512 else 512
    steps = pl.cdiv(BH, tb)
    return pl.pallas_call(
        _attn_kernel(scale, causal),
        grid=(steps,),
        in_specs=[pl.BlockSpec((tb, Sq, Dp), lambda i: (i, 0, 0)),
                  pl.BlockSpec((tb, Sk, Dp), lambda i: (i, 0, 0)),
                  pl.BlockSpec((tb, Sk, Dp), lambda i: (i, 0, 0))],
        out_specs=pl.BlockSpec((tb, Sq, Dp), lambda i: (i, 0, 0)),
        out_shape=jax.ShapeDtypeStruct((BH, Sq, Dp), jnp.float32),
        compiler_params=_params(1),
    )(q, k, v)


def _ec_head_kernel(eps):
    def kernel(x_ref, g_ref, b_ref, o_ref):
        p = jnp.max(x_ref[...], axis=1)               # max over the word-seq axis
        ln = _ln(p, g_ref[...], b_ref[...], eps)
        o_ref[...] = jax.nn.sigmoid(p + ln)           # sigmoid(pred + LayerNorm(pred))
    return kernel


def ec_head(x, gamma, beta, eps=1e-5):
    M, T, E = x.shape
    return pl.pallas_call(
        _ec_head_kernel(eps),
        grid=(1,),
        in_specs=[pl.BlockSpec((M, T, E), lambda i: (0, 0, 0)),
                  pl.BlockSpec((1, E), lambda i: (0, 0)),
                  pl.BlockSpec((1, E), lambda i: (0, 0))],
        out_specs=pl.BlockSpec((M, E), lambda i: (0, 0)),
        out_shape=jax.ShapeDtypeStruct((M, E), jnp.float32),
        compiler_params=_params(1),
    )(x, gamma.reshape(1, E), beta.reshape(1, E))


def _mlp_kernel():
    def kernel(x_ref, w1_ref, b1_ref, w2_ref, b2_ref, w3_ref, b3_ref, o_ref):
        h = jnp.maximum(_mm(x_ref[...], w1_ref[...]) + b1_ref[...], 0.0)
        h = jnp.maximum(_mm(h, w2_ref[...]) + b2_ref[...], 0.0)
        o_ref[...] = jnp.tanh(_mm(h, w3_ref[...]) + b3_ref[...])
    return kernel


def mlp_head(x, p):
    """Fused 3-layer MLP: tanh(relu(relu(x@w1+b1)@w2+b2)@w3+b3)."""
    K = x.shape[-1]
    lead = x.shape[:-1]
    M = int(np.prod(lead))
    F1, F2, N = p['mlp_w1'].shape[1], p['mlp_w2'].shape[1], p['mlp_w3'].shape[1]
    tm, steps = _row_grid(M)
    out = pl.pallas_call(
        _mlp_kernel(),
        grid=(steps,),
        in_specs=[pl.BlockSpec((tm, K), lambda i: (i, 0)),
                  pl.BlockSpec((K, F1), lambda i: (0, 0)),
                  pl.BlockSpec((1, F1), lambda i: (0, 0)),
                  pl.BlockSpec((F1, F2), lambda i: (0, 0)),
                  pl.BlockSpec((1, F2), lambda i: (0, 0)),
                  pl.BlockSpec((F2, N), lambda i: (0, 0)),
                  pl.BlockSpec((1, N), lambda i: (0, 0))],
        out_specs=pl.BlockSpec((tm, N), lambda i: (i, 0)),
        out_shape=jax.ShapeDtypeStruct((M, N), jnp.float32),
        compiler_params=_params(1),
    )(x.reshape(M, K).astype(jnp.float32),
      p['mlp_w1'], p['mlp_b1'].reshape(1, F1),
      p['mlp_w2'], p['mlp_b2'].reshape(1, F2),
      p['mlp_w3'], p['mlp_b3'].reshape(1, N))
    return out.reshape(lead + (N,))


def _lstm_kernel(B, T, H):
    def kernel(x_ref, w_ref, o_ref):
        w = w_ref[...]                                # (H, 4H): fused [i|f|g|o]

        def step(t, carry):
            h, c = carry
            g = x_ref[t] + _mm(h, w)                  # one fused gate matmul per step
            i = jax.nn.sigmoid(g[:, :H])
            f = jax.nn.sigmoid(g[:, H:2 * H])
            gg = jnp.tanh(g[:, 2 * H:3 * H])
            o = jax.nn.sigmoid(g[:, 3 * H:])
            c = f * c + i * gg
            h = o * jnp.tanh(c)
            o_ref[t] = h
            return (h, c)

        init = (jnp.zeros((B, H), jnp.float32), jnp.zeros((B, H), jnp.float32))
        jax.lax.fori_loop(0, T, step, init, unroll=True)
    return kernel


def lstm_both_directions(xg, w_hh, B, T, H):
    """xg: (2, T, B, 4H) pre-projected gates (fwd, time-reversed bwd);
       w_hh: (2, H, 4H).  grid=(2,) 'parallel' -> both directions (both TCs on v7x)."""
    return pl.pallas_call(
        _lstm_kernel(B, T, H),
        grid=(2,),
        in_specs=[pl.BlockSpec((None, T, B, 4 * H), lambda d: (d, 0, 0, 0)),
                  pl.BlockSpec((None, H, 4 * H), lambda d: (d, 0, 0))],
        out_specs=pl.BlockSpec((None, T, B, H), lambda d: (d, 0, 0, 0)),
        out_shape=jax.ShapeDtypeStruct((2, T, B, H), jnp.float32),
        compiler_params=_params(1),
    )(xg, w_hh)


# ------------------------------ model pieces -------------------------------

def _split_heads(t, S, N, H, Dh, Dp):
    t = t.reshape(S, N, H, Dh).transpose(1, 2, 0, 3).reshape(N * H, S, Dh)
    if Dp > Dh:
        t = jnp.pad(t, ((0, 0), (0, 0), (0, Dp - Dh)))   # zero-pad: exact, lane-dense
    return t


def _merge_heads(o, S, N, H, Dh):
    return o[:, :, :Dh].reshape(N, H, S, Dh).transpose(2, 0, 1, 3).reshape(S, N, H * Dh)


def multihead_attention(q, k, v, H, causal):
    """q: (Sq, N, E), k/v: (Sk, N, E) -- seq-first (PyTorch batch_first=False)."""
    Sq, N, E = q.shape
    Sk = k.shape[0]
    Dh = E // H
    Dp = ((Dh + LANE - 1) // LANE) * LANE
    scale = 1.0 / math.sqrt(Dh)
    qh = _split_heads(q, Sq, N, H, Dh, Dp)
    kh = _split_heads(k, Sk, N, H, Dh, Dp)
    vh = _split_heads(v, Sk, N, H, Dh, Dp)
    o = scaled_attention(qh, kh, vh, scale, causal)      # one call for all heads
    return _merge_heads(o, Sq, N, H, Dh)


def self_attention_block(x, p, H, causal, ln_g, ln_b):
    _, _, E = x.shape
    qkv = linear(x, p['wqkv'], p['bqkv'])                # fused Q|K|V projection
    q, k, v = qkv[..., :E], qkv[..., E:2 * E], qkv[..., 2 * E:]
    o = multihead_attention(q, k, v, H, causal)
    # output projection + residual + LayerNorm fused in one kernel
    return linear_residual_ln(o, p['wo'], p['bo'], x, ln_g, ln_b)


def cross_attention_block(x, mem, p, H, ln_g, ln_b):
    _, _, E = x.shape
    q = linear(x, p['wq'], p['bq'])
    kv = linear(mem, p['wkv'], p['bkv'])                 # fused K|V projection
    k, v = kv[..., :E], kv[..., E:]
    o = multihead_attention(q, k, v, H, False)
    return linear_residual_ln(o, p['wo'], p['bo'], x, ln_g, ln_b)


def encoder_layer(x, p, nheads, causal, activation='relu'):
    x = self_attention_block(x, p['attn'], nheads, causal, p['ln1_g'], p['ln1_b'])
    if activation == 'gelu':
        # TODO(synk): exact erf-GELU stays in plain JAX (erf lowering inside Pallas is
        # not guaranteed); the w1 matmul and the w2+residual+LN stages remain fused.
        h = linear(x, p['w1'], p['b1'])
        h = jax.nn.gelu(h, approximate=False)
        x = linear_residual_ln(h, p['w2'], p['b2'], x, p['ln2_g'], p['ln2_b'])
    else:
        x = ffn_residual_ln(x, p['w1'], p['b1'], p['w2'], p['b2'],
                            p['ln2_g'], p['ln2_b'])
    return x


def decoder_layer(x, mem, p, nheads):
    x = self_attention_block(x, p['self_attn'], nheads, True, p['ln1_g'], p['ln1_b'])
    x = cross_attention_block(x, mem, p['cross_attn'], nheads, p['ln2_g'], p['ln2_b'])
    return ffn_residual_ln(x, p['w1'], p['b1'], p['w2'], p['b2'],
                           p['ln3_g'], p['ln3_b'])


def bilstm(x, p, mid):
    """Bidirectional 1-layer LSTM (batch_first): x (B, T, inp) -> (B, T, 2*mid)."""
    B, T, _ = x.shape
    # one fused input-gate projection for BOTH directions: cols = [fwd ifgo | bwd ifgo]
    proj = linear(x, p['w_ih_all'], p['b_ih_all'])            # (B, T, 8*mid)
    pf = proj[..., :4 * mid]
    pb = proj[..., 4 * mid:][:, ::-1, :]                      # reverse time for bwd dir
    xg = jnp.stack([pf.transpose(1, 0, 2), pb.transpose(1, 0, 2)], axis=0)  # (2,T,B,4H)
    hs = lstm_both_directions(xg, p['w_hh'], B, T, mid)       # (2, T, B, H)
    h_f = hs[0].transpose(1, 0, 2)
    h_b = hs[1].transpose(1, 0, 2)[:, ::-1, :]
    return jnp.concatenate([h_f, h_b], axis=-1)


def ec_forward(pid_flat, p, cfg):
    """EC.forward_func on the flattened pid list -> (M, n_question)."""
    tokens = p['data_content'][pid_flat]            # (M, Tw) word ids (plain-JAX gather)
    x = p['word_emb'][tokens]                       # (M, Tw, inp_size)
    h = bilstm(x, p['lstm'], cfg['mid_size'])       # (M, Tw, 2*mid)
    ques = linear(h, p['k_net_w'])                  # k_net: no bias, tied weights
    # nn.TransformerEncoderLayer (seq-first): attends over axis 0 (M), no mask, gelu
    y = encoder_layer(ques, p['block'], nheads=cfg['n_question'],
                      causal=False, activation='gelu')
    return ec_head(y, p['ln_g'], p['ln_b'])         # sigmoid(max + LN(max))


def kt_forward(qa_data, pid_data, params, cfg):
    bs, lr = pid_data.shape
    nq = cfg['n_question']
    d_model = 2 * cfg['mid_size']
    q_data = ec_forward(pid_data.reshape(-1), params['ec'], cfg).reshape(bs, lr, nq)

    qa = qa_data * jnp.concatenate([q_data, q_data], axis=-1)
    # fused (embed | embed_diff) projections: one matmul per input instead of two
    qe = linear(q_data, params['q_embed_all_w'], params['q_embed_all_b'])
    qae = linear(qa, params['qa_embed_all_w'], params['qa_embed_all_b'])
    q_embed, q_embed_diff = qe[..., :d_model], qe[..., d_model:]
    qa_embed, qa_embed_diff = qae[..., :d_model], qae[..., d_model:]
    pid_embed = params['difficult_param'][pid_data]        # (bs, lr, 1)
    q_embed = q_embed + pid_embed * q_embed_diff
    qa_embed = qa_embed + pid_embed * qa_embed_diff

    # TransformerBlock: seq-first layers -> attention over axis 0 (= bs) with a
    # (bs, bs) causal mask, exactly as the PyTorch code does.  The mask is
    # generated in-kernel from iota (no HBM mask input).
    x, y = q_embed, qa_embed
    nheads = cfg['n_heads']
    for blk in params['att_enc']:
        y = encoder_layer(y, blk, nheads, causal=True, activation='relu')
    flg = True
    for blk in params['att_dec']:
        if flg:
            x = decoder_layer(x, x, blk, nheads)
            flg = False
        else:
            x = decoder_layer(x, y, blk, nheads)
            flg = True

    concat_q = jnp.concatenate([x, q_embed], axis=-1)
    return mlp_head(concat_q, params)                      # (bs, lr, 1)


# ------------------------------ parameter init ------------------------------

def init_params(key, cfg):
    nq, mid = cfg['n_question'], cfg['mid_size']
    d_model = 2 * mid
    d_ff, ffc, inp = cfg['d_ff'], cfg['final_fc_dim'], cfg['inp_size']
    state = {'key': key}

    def nrm(shape, scale=0.1):
        state['key'], sub = jax.random.split(state['key'])
        return (scale * jax.random.normal(sub, shape)).astype(jnp.float32)

    def mha_self_p(E):
        return dict(wqkv=nrm((E, 3 * E)), bqkv=nrm((3 * E,)),
                    wo=nrm((E, E)), bo=nrm((E,)))

    def mha_cross_p(E):
        return dict(wq=nrm((E, E)), bq=nrm((E,)),
                    wkv=nrm((E, 2 * E)), bkv=nrm((2 * E,)),
                    wo=nrm((E, E)), bo=nrm((E,)))

    def enc_p(E, F):
        return dict(attn=mha_self_p(E),
                    ln1_g=jnp.ones((E,), jnp.float32), ln1_b=jnp.zeros((E,), jnp.float32),
                    w1=nrm((E, F)), b1=nrm((F,)), w2=nrm((F, E)), b2=nrm((E,)),
                    ln2_g=jnp.ones((E,), jnp.float32), ln2_b=jnp.zeros((E,), jnp.float32))

    def dec_p(E, F):
        return dict(self_attn=mha_self_p(E), cross_attn=mha_cross_p(E),
                    ln1_g=jnp.ones((E,), jnp.float32), ln1_b=jnp.zeros((E,), jnp.float32),
                    ln2_g=jnp.ones((E,), jnp.float32), ln2_b=jnp.zeros((E,), jnp.float32),
                    ln3_g=jnp.ones((E,), jnp.float32), ln3_b=jnp.zeros((E,), jnp.float32),
                    w1=nrm((E, F)), b1=nrm((F,)), w2=nrm((F, E)), b2=nrm((E,)))

    q_embed_w = nrm((nq, d_model))
    q_embed_b = nrm((d_model,))
    q_embed_diff_w = nrm((nq, d_model))
    q_embed_diff_b = nrm((d_model,))
    qa_embed_w = nrm((2 * nq, d_model))
    qa_embed_b = nrm((d_model,))
    qa_embed_diff_w = nrm((2 * nq, d_model))
    qa_embed_diff_b = nrm((d_model,))

    state['key'], sub = jax.random.split(state['key'])
    # synthetic ec_data: fixed-length word sequences per problem id (pad_sequence no-op)
    data_content = jax.random.randint(sub, (cfg['n_pid'], cfg['n_words']), 0, cfg['word_num'])

    ec = dict(
        data_content=data_content,
        word_emb=nrm((cfg['word_num'], inp), 1.0),
        # LSTM: input-gate weights of both directions fused into (inp, 8*mid);
        # recurrent weights per direction fused into (mid, 4*mid), gate order i|f|g|o.
        lstm=dict(w_ih_all=nrm((inp, 8 * mid)), b_ih_all=nrm((8 * mid,)),
                  w_hh=nrm((2, mid, 4 * mid))),
        k_net_w=q_embed_w.T,            # weight tying: ec_net.k_net.weight = q_embed.weight.t()
        block=enc_p(nq, 2048),          # nn.TransformerEncoderLayer default dim_feedforward
        ln_g=jnp.ones((nq,), jnp.float32), ln_b=jnp.zeros((nq,), jnp.float32),
    )

    # NOTE: KT.reset() only zeroes params with first dim == n_pid + 1; none exist here
    # (difficult_param has first dim n_pid), so it is a no-op -- keep random init.
    return dict(
        ec=ec,
        q_embed_all_w=jnp.concatenate([q_embed_w, q_embed_diff_w], axis=1),
        q_embed_all_b=jnp.concatenate([q_embed_b, q_embed_diff_b]),
        qa_embed_all_w=jnp.concatenate([qa_embed_w, qa_embed_diff_w], axis=1),
        qa_embed_all_b=jnp.concatenate([qa_embed_b, qa_embed_diff_b]),
        difficult_param=nrm((cfg['n_pid'], 1), 1.0),
        att_enc=[enc_p(d_model, d_ff) for _ in range(cfg['n_blocks'])],
        att_dec=[dec_p(d_model, d_ff) for _ in range(cfg['n_blocks'] * 2)],
        mlp_w1=nrm((2 * d_model, ffc)), mlp_b1=nrm((ffc,)),
        mlp_w2=nrm((ffc, 256)), mlp_b2=nrm((256,)),
        mlp_w3=nrm((256, 1)), mlp_b3=nrm((1,)),
    )


# ----------------------------------- main -----------------------------------

if __name__ == "__main__":
    # TODO(synk): dropout layers (LSTM/Transformer/MLP) are treated as eval-mode identity.
    cfg = dict(n_question=8, n_pid=10, mid_size=16, n_blocks=1, n_heads=8,
               d_ff=64, final_fc_dim=64, inp_size=50, word_num=20, n_words=7)
    key = jax.random.PRNGKey(0)
    kp, k1, k2 = jax.random.split(key, 3)
    params = init_params(kp, cfg)

    bs, lr = 2, 4
    pid_data = jax.random.randint(k1, (bs, lr), 0, cfg['n_pid'])
    qa_data = jax.random.normal(k2, (bs, lr, 2 * cfg['n_question']), dtype=jnp.float32)

    out = kt_forward(qa_data, pid_data, params, cfg)
    out = jax.block_until_ready(out)
    assert out.shape == (bs, lr, 1) and out.dtype == jnp.float32
    print("KERNEL_OK")
</pallas_src>

<mosaic_0001>
module attributes {stable_mosaic.version = 11 : i64} {
  func.func @kernel(%arg0: i32, %arg1: memref<56x50xf32, #tpu.memory_space<vmem>>, %arg2: memref<50x128xf32, #tpu.memory_space<vmem>>, %arg3: memref<1x128xf32, #tpu.memory_space<vmem>>, %arg4: memref<56x128xf32, #tpu.memory_space<vmem>>) attributes {dimension_semantics = [#tpu.dimension_semantics<parallel>], iteration_bounds = array<i64: 1>, scalar_prefetch = 0 : i64, scratch_operands = 0 : i64, tpu.core_type = #tpu.core_type<tc>, window_params = [{transform_indices = @transform_0, window_bounds = array<i64: 56, 50>}, {pipeline_mode = #tpu.pipeline_mode<synchronous>, transform_indices = @transform_1, window_bounds = array<i64: 50, 128>}, {pipeline_mode = #tpu.pipeline_mode<synchronous>, transform_indices = @transform_2, window_bounds = array<i64: 1, 128>}, {transform_indices = @transform_3, window_bounds = array<i64: 56, 128>}]} {
    %c0 = arith.constant 0 : index
    %c0_0 = arith.constant 0 : index
    %0 = vector.load %arg1[%c0, %c0_0] : memref<56x50xf32, #tpu.memory_space<vmem>>, vector<56x50xf32>
    %c0_1 = arith.constant 0 : index
    %c0_2 = arith.constant 0 : index
    %1 = vector.load %arg2[%c0_1, %c0_2] : memref<50x128xf32, #tpu.memory_space<vmem>>, vector<50x128xf32>
    %cst = arith.constant dense<0.000000e+00> : vector<56x128xf32>
    %2 = tpu.matmul %0, %1, %cst {dimension_numbers = #tpu.dot_dimension_numbers<[1], [0], [0], [1], [0, 0, 1, 1], [], []>} : vector<56x50xf32>, vector<50x128xf32>, vector<56x128xf32> -> vector<56x128xf32>
    %c0_3 = arith.constant 0 : index
    %c0_4 = arith.constant 0 : index
    %3 = vector.load %arg3[%c0_3, %c0_4] : memref<1x128xf32, #tpu.memory_space<vmem>>, vector<1x128xf32>
    %4 = vector.broadcast %3 : vector<1x128xf32> to vector<56x128xf32>
    %5 = arith.addf %2, %4 : vector<56x128xf32>
    %c0_5 = arith.constant 0 : index
    %c0_6 = arith.constant 0 : index
    %6 = vector.load %arg4[%c0_5, %c0_6] : memref<56x128xf32, #tpu.memory_space<vmem>>, vector<56x128xf32>
    tpu.vector_store %arg4[%c0_5, %c0_6], %5 {strides = array<i32>} : memref<56x128xf32, #tpu.memory_space<vmem>>, vector<56x128xf32>,
    return
  }
  func.func @transform_0(%arg0: i32) -> (i32, i32) {
    %c0_i32 = arith.constant 0 : i32
    %c0_i32_0 = arith.constant 0 : i32
    return %arg0, %c0_i32 : i32, i32
  }
  func.func @transform_1(%arg0: i32) -> (i32, i32) {
    %c0_i32 = arith.constant 0 : i32
    %c0_i32_0 = arith.constant 0 : i32
    %c0_i32_1 = arith.constant 0 : i32
    return %c0_i32, %c0_i32_0 : i32, i32
  }
  func.func @transform_2(%arg0: i32) -> (i32, i32) {
    %c0_i32 = arith.constant 0 : i32
    %c0_i32_0 = arith.constant 0 : i32
    %c0_i32_1 = arith.constant 0 : i32
    return %c0_i32, %c0_i32_0 : i32, i32
  }
  func.func @transform_3(%arg0: i32) -> (i32, i32) {
    %c0_i32 = arith.constant 0 : i32
    %c0_i32_0 = arith.constant 0 : i32
    return %arg0, %c0_i32 : i32, i32
  }
}

</mosaic_0001>

<bundles_post_ra>
// kernel: tpu_custom_call.1
= control target key start
LH: loop header
LB: loop body
LE: loop exit
PB: predicated region body
PF: predicated region fallthrough
CT: control target
= control target key end

     0   :  { %8 = vsyncpa [#allocation3], 0  ;;  %s322_s0 = inlined_call_operand.hbm [shape: f32[56,50], index: 0, kind: input, shape index: {}]   ;;  %s323_s1 = inlined_call_operand.hbm [shape: f32[50,128], index: 1, kind: input, shape index: {}]   ;;  %s324_s2 = inlined_call_operand.vmem [shape: f32[1,128], index: 2, kind: input, shape index: {}]   ;;  %s325_s3 = inlined_call_operand.hbm [shape: f32[56,128], index: 3, kind: output, shape index: {}]  }
   0x1   :  { %9 = vsyncpa [#allocation6], 0 }
   0x2   :  { %10 = vsyncpa [#allocation4], 0  ;;  %s15_s14 = sshll.u32 %s322_s0, 4  ;;  %s269_s15 = smov [#allocation2]   ;;  %s16_s14 = int_to_ptr.hbm [resolvable:$true] %s15_s14 }
   0x3   :  { %s17_s16 = sshll.u32 %s269_s15, 4  ;;  %s28_s19 = sshll.u32 %s323_s1, 4  ;;  %s18_s16 = int_to_ptr.vmem [resolvable:$true] %s17_s16  ;;  %s29_s19 = int_to_ptr.hbm [resolvable:$true] %s28_s19 }
   0x4   :  { %s270_s20 = smov 128   ;;  %s271_s21 = smov 8  }
   0x5   :  { %23 = dma.hbm_to_vmem [thread:$0]  %s16_s14, 896, %s18_s16, [#allocation3], %s270_s20, %s270_s20, %s271_s21  }
   0x6   :  { %s272_s22 = smov [#allocation5]  }
   0x7   :  { %s30_s23 = sshll.u32 %s272_s22, 4  ;;  %s31_s23 = int_to_ptr.vmem [resolvable:$true] %s30_s23 }
   0x8   :  { %36 = dma.hbm_to_vmem [thread:$0]  %s29_s19, 896, %s31_s23, [#allocation6], %s270_s20, %s270_s20, %s271_s21  }
   0x9   :  { %263 = dma.done.wait [#allocation3], 896  }
   0xa   :  { %264 = vsyncadd [#allocation3], 4294966400 }
   0xb   :  { %265 = dma.done.wait [#allocation6], 896  }
   0xc   :  { %266 = vsyncadd [#allocation6], 4294966400  ;;  %vm87_vm0 = vcmask 1041408   ;;  %v60_v0 = vld [vmem:[#allocation5 + $0x30] sm:$0x3]  ;;  %v59_v1 = vld [vmem:[#allocation5 + $0x28] sm:$0xff] }
   0xd   :  { %165 = vmatpush.msk.msra.mxu2 %vm87_vm0, %v60_v0  ;;  %166 = vmatpush.msk.msra.mxu3 %vm87_vm0, %v60_v0  ;;  %v58_v2 = vld [vmem:[#allocation5 + $0x20] sm:$0xff]  ;;  %v57_v3 = vld [vmem:[#allocation5 + $0x18] sm:$0xff]  ;;  %v56_v4 = vld [vmem:[#allocation5 + $0x10] sm:$0xff]  ;;  %vm65_vm1 = vcmask 408576   ;;  %s273_s24 = smov [#allocation7]  }
   0xe   :  { %164 = vmatpush.msk.msra.mxu1 %vm87_vm0, %v60_v0  ;;  %156 = vmatpush.msk.msra.mxu0 %vm87_vm0, %v60_v0  ;;  %v55_v5 = vld [vmem:[#allocation5 + $0x8] sm:$0xff]  ;;  %v54_v6 = vld [vmem:[#allocation5] sm:$0xff]  ;;  %v52_v8 = vld [vmem:[#allocation2 + $0x28] sm:$0xff]  ;;  %s140_s25 = sshll.u32 %s273_s24, 4  ;;  %s141_s25 = int_to_ptr.vmem [resolvable:$true] %s140_s25 }
   0xf   :  { %168 = vmatpush.msra.mxu2 %v59_v1  ;;  %169 = vmatpush.msra.mxu3 %v59_v1  ;;  %v50_v7 = vld [vmem:[#allocation2 + $0x18] sm:$0xff]  ;;  %v48_v9 = vld [vmem:[#allocation2 + $0x8] sm:$0xff]  ;;  %v47_v10 = vld [vmem:[#allocation2] sm:$0xff] }
  0x10   :  { %167 = vmatpush.msra.mxu1 %v59_v1  ;;  %101 = vmatpush.msra.mxu0 %v59_v1  ;;  %v51_v11 = vld [vmem:[#allocation2 + $0x20] sm:$0xff]  ;;  %v53_v12 = vld [vmem:[#allocation2 + $0x30] sm:$0xff] }
  0x11   :  { %171 = vmatpush.msra.mxu2 %v58_v2  ;;  %172 = vmatpush.msra.mxu3 %v58_v2  ;;  %v49_v13 = vld [vmem:[#allocation2 + $0x10] sm:$0xff]  ;;  %v190_v14 = vld [vmem:[%s324_s2] ss:$0 sm:$0xff]  ;;  %s142_s2 = sshll.u32 %s325_s3, 4  ;;  %s143_s2 = int_to_ptr.hbm [resolvable:$true] %s142_s2 }
  0x12   :  { %170 = vmatpush.msra.mxu1 %v58_v2  ;;  %102 = vmatpush.msra.mxu0 %v58_v2 }
  0x13   :  { %174 = vmatpush.msra.mxu2 %v57_v3  ;;  %175 = vmatpush.msra.mxu3 %v57_v3 }
  0x14   :  { %173 = vmatpush.msra.mxu1 %v57_v3  ;;  %103 = vmatpush.msra.mxu0 %v57_v3 }
  0x15   :  { %177 = vmatpush.msra.mxu2 %v56_v4  ;;  %178 = vmatpush.msra.mxu3 %v56_v4 }
  0x16   :  { %176 = vmatpush.msra.mxu1 %v56_v4  ;;  %104 = vmatpush.msra.mxu0 %v56_v4 }
  0x17   :  { %180 = vmatpush.msra.mxu2 %v55_v5  ;;  %181 = vmatpush.msra.mxu3 %v55_v5 }
  0x18   :  { %179 = vmatpush.msra.mxu1 %v55_v5  ;;  %105 = vmatpush.msra.mxu0 %v55_v5 }
  0x19   :  { %183 = vmatpush.msra.mxu2 %v54_v6  ;;  %184 = vmatpush.msra.mxu3 %v54_v6 }
  0x1a   :  { %160 = vmatmul.msk.f32.vlgmr.msra.gmra.mxu2 %vm65_vm1, %v50_v7  ;;  %162 = vmatmul.msk.f32.vlgmr.msra.gmra.mxu3 %vm65_vm1, %v52_v8 }
  0x1b   :  { %182 = vmatpush.msra.mxu1 %v54_v6  ;;  %106 = vmatpush.msra.mxu0 %v54_v6 }
  0x1c   :  { %158 = vmatmul.msk.f32.vlgmr.msra.gmra.mxu1 %vm65_vm1, %v48_v9  ;;  %157 = vmatmul.msk.f32.vlgmr.msra.gmra.mxu0 %vm65_vm1, %v47_v10 }
  0x22   :  { %161 = vmatmul.msk.f32.gmra.mxu2 %vm65_vm1, %v51_v11  ;;  %163 = vmatmul.msk.f32.gmra.mxu3 %vm65_vm1, %v53_v12 }
  0x24   :  { %159 = vmatmul.msk.f32.gmra.mxu1 %vm65_vm1, %v49_v13 }
  0x99   :  { %v111_v15 = vpop.f32.mrf.mxu1  ;;  %v108_v16 = vpop.f32.mrf.mxu0 }
  0x9a   :  { %v112_v17 = vadd.f32 %v190_v14, %v111_v15  ;;  %v109_v18 = vadd.f32 %v190_v14, %v108_v16 }
  0x9c   :  { %130 = vst [vmem:[#allocation7 + $0x8] sm:$0xff] %v112_v17 }
  0x9d   :  { %v117_v19 = vpop.f32.mrf.mxu2  ;;  %v123_v20 = vpop.f32.mrf.mxu3  ;;  %129 = vst [vmem:[#allocation7] sm:$0xff] %v109_v18 }
  0x9e   :  { %v118_v21 = vadd.f32 %v190_v14, %v117_v19  ;;  %v124_v22 = vadd.f32 %v190_v14, %v123_v20 }
  0xa0   :  { %132 = vst [vmem:[#allocation7 + $0x18] sm:$0xff] %v118_v21 }
  0xa1   :  { %134 = vst [vmem:[#allocation7 + $0x28] sm:$0xff] %v124_v22  ;;  %v114_v23 = vpop.f32.mrf.mxu1 }
  0xa2   :  { %v115_v24 = vadd.f32 %v190_v14, %v114_v23 }
  0xa4   :  { %131 = vst [vmem:[#allocation7 + $0x10] sm:$0xff] %v115_v24 }
  0xa5   :  { %v120_v25 = vpop.f32.mrf.mxu2  ;;  %v126_v26 = vpop.f32.mrf.mxu3 }
  0xa6   :  { %v121_v27 = vadd.f32 %v190_v14, %v120_v25  ;;  %v127_v28 = vadd.f32 %v190_v14, %v126_v26 }
  0xa8   :  { %133 = vst [vmem:[#allocation7 + $0x20] sm:$0xff] %v121_v27 }
  0xa9   :  { %135 = vst [vmem:[#allocation7 + $0x30] sm:$0xff] %v127_v28 }
  0xaa   :  { %148 = dma.vmem_to_hbm [thread:$0]  %s141_s25, 896, %s143_s2, [#allocation4], %s270_s20, %s270_s20, %s271_s21  }
  0xab   :  { %267 = dma.done.wait [#allocation4], 896  }
  0xac   :  { %268 = vsyncadd [#allocation4], 4294966400 }
  0xad   :  { %153 = vsyncpa [#allocation3], 1 }
  0xae   :  { %154 = vsyncpa [#allocation6], 1 }
  0xaf   :  { %155 = vsyncpa [#allocation4], 1 }

</bundles_post_ra>
